<compile_context>
chip_gen: v7x
topology: tpu7x:2x2x1
jax: 0.10.0
libtpu: 0.0.40
codegen_flags: <defaults>
</compile_context>

<pallas_src>
import functools

import jax
import jax.numpy as jnp
from jax.experimental import pallas as pl
from jax.experimental.pallas import tpu as pltpu

BN_EPS = 1e-5

# Safe on every TPU generation (<= default scoped limit on v6e/v7x, well below
# physical everywhere); the tiles below are sized far under it.
# TODO(synk): on v7x re-sweep the tile size against the 64 MiB physical VMEM
# if hidden_dim grows large.
_VMEM_LIMIT = 32 * 1024 * 1024
_FUSED_VMEM_BUDGET = 8 * 1024 * 1024   # whole-batch path if activations fit.


# ----------------------------------------------------------------------------
# Fused single-call kernel (whole batch resident).  All tensors transposed:
# x^T (D, N), hidden activations (H, N), output (1, N).
# ----------------------------------------------------------------------------
def _fused_kernel(xt_ref, w1_ref, g1_ref, be1_ref, w2_ref, b2_ref,
                  g2_ref, be2_ref, wf_ref, bf_ref, o_ref,
                  *, eps_off, eps_scale, inv_n):
    # h1^T = W1 @ x^T      (Linear bias b1 omitted: cancels inside BatchNorm)
    h1 = jnp.dot(w1_ref[...], xt_ref[...], preferred_element_type=jnp.float32)

    # BN1 (train mode): one-pass stats, folded into scale/shift.
    mu1 = jnp.sum(h1, axis=1, keepdims=True) * inv_n                 # (H, 1)
    ex2 = jnp.sum(h1 * h1, axis=1, keepdims=True) * inv_n            # (H, 1)
    sc1 = g1_ref[...] * jax.lax.rsqrt(ex2 - mu1 * mu1 + BN_EPS)
    sh1 = be1_ref[...] - mu1 * sc1
    a = jnp.maximum(h1 * sc1 + sh1, 0.0)                             # (H, N)

    # middle Linear + relu
    h2 = jnp.maximum(
        jnp.dot(w2_ref[...], a, preferred_element_type=jnp.float32) + b2_ref[...],
        0.0)

    # BN2 + relu
    mu2 = jnp.sum(h2, axis=1, keepdims=True) * inv_n
    ex22 = jnp.sum(h2 * h2, axis=1, keepdims=True) * inv_n
    sc2 = g2_ref[...] * jax.lax.rsqrt(ex22 - mu2 * mu2 + BN_EPS)
    sh2 = be2_ref[...] - mu2 * sc2
    b = jnp.maximum(h2 * sc2 + sh2, 0.0)

    # residual + final projection (VPU mul + cross-sublane reduce, no MXU)
    r = b + a
    logit = jnp.sum(r * wf_ref[...], axis=0, keepdims=True) + bf_ref[...]  # (1, N)

    # squashed sigmoid; pl.reciprocal(..., approx=True) is an extra EUP win
    # if a ~1e-3 tolerance is acceptable.
    sig = pl.reciprocal(1.0 + jnp.exp(-logit))
    o_ref[...] = eps_off + eps_scale * sig


# ----------------------------------------------------------------------------
# Tiled 3-phase pipeline (batch on the grid, batch tiles on the lane axis).
# ----------------------------------------------------------------------------
def _h1_stats_kernel(xt_ref, w1_ref, h1t_ref, sum1_ref, ssq1_ref):
    @pl.when(pl.program_id(0) == 0)
    def _():
        sum1_ref[...] = jnp.zeros_like(sum1_ref)
        ssq1_ref[...] = jnp.zeros_like(ssq1_ref)

    # h1^T tile = W1 @ x^T tile   (bias dropped: cancels in BN)
    h1t = jnp.dot(w1_ref[...], xt_ref[...], preferred_element_type=jnp.float32)
    h1t_ref[...] = h1t
    sum1_ref[...] += jnp.sum(h1t, axis=1, keepdims=True)
    ssq1_ref[...] += jnp.sum(h1t * h1t, axis=1, keepdims=True)


def _h2_stats_kernel(h1t_ref, s1_ref, t1_ref, w2_ref, b2_ref,
                     h2t_ref, sum2_ref, ssq2_ref):
    @pl.when(pl.program_id(0) == 0)
    def _():
        sum2_ref[...] = jnp.zeros_like(sum2_ref)
        ssq2_ref[...] = jnp.zeros_like(ssq2_ref)

    # apply folded BN1 + relu, then middle Linear + relu
    a = jnp.maximum(h1t_ref[...] * s1_ref[...] + t1_ref[...], 0.0)     # (H, T)
    h2t = jnp.maximum(
        jnp.dot(w2_ref[...], a, preferred_element_type=jnp.float32) + b2_ref[...],
        0.0)
    h2t_ref[...] = h2t
    sum2_ref[...] += jnp.sum(h2t, axis=1, keepdims=True)
    ssq2_ref[...] += jnp.sum(h2t * h2t, axis=1, keepdims=True)


def _finalize_kernel(h1t_ref, h2t_ref, s1_ref, t1_ref, s2_ref, t2_ref,
                     wf_ref, bf_ref, o_ref, *, eps_off, eps_scale):
    # recompute a (cheap FMA+relu) instead of round-tripping it through HBM
    a = jnp.maximum(h1t_ref[...] * s1_ref[...] + t1_ref[...], 0.0)
    b = jnp.maximum(h2t_ref[...] * s2_ref[...] + t2_ref[...], 0.0)
    r = b + a
    logit = jnp.sum(r * wf_ref[...], axis=0, keepdims=True) + bf_ref[...]  # (1, T)
    sig = pl.reciprocal(1.0 + jnp.exp(-logit))
    o_ref[...] = eps_off + eps_scale * sig       # lane-dense (1, TILE_N) store


# ----------------------------------------------------------------------------
# Wrappers
# ----------------------------------------------------------------------------
def _fold_bn(s, ssq, n, gamma, beta):
    """Fold train-mode BN(sum, sumsq, gamma, beta) into scale/shift (tiny XLA)."""
    mu = s / n
    var = ssq / n - mu * mu                       # biased batch variance
    scale = gamma * jax.lax.rsqrt(var + BN_EPS)
    shift = beta - mu * scale
    return scale, shift


def _pick_tile(n, cap=1024):
    """Largest multiple-of-128 tile <= cap that divides n, else the full batch."""
    best = n       # single-tile fallback: block dims == full dims, always legal
    t = 128
    while t <= min(n, cap):
        if n % t == 0:
            best = t
        t += 128
    # TODO(synk): masked tail tile for N not divisible by 128 (stats must
    # exclude padded rows) instead of the single-tile fallback.
    return best


def _forward_fused(xt, p, eps_off, eps_scale):
    D, N = xt.shape
    args = (xt, p["w1"], p["g1"], p["be1"], p["w2"], p["b2"],
            p["g2"], p["be2"], p["wf"], p["bf"])
    out = pl.pallas_call(
        functools.partial(_fused_kernel, eps_off=eps_off, eps_scale=eps_scale,
                          inv_n=1.0 / N),
        out_shape=jax.ShapeDtypeStruct((1, N), jnp.float32),
        in_specs=[pl.BlockSpec(a.shape, lambda: (0, 0)) for a in args],
        out_specs=pl.BlockSpec((1, N), lambda: (0, 0)),
        compiler_params=pltpu.CompilerParams(vmem_limit_bytes=_VMEM_LIMIT),
    )(*args)
    return out.reshape(N, 1)


def _forward_tiled(xt, p, eps_off, eps_scale, tile_n):
    D, N = xt.shape
    H = p["w1"].shape[0]
    nt = N // tile_n

    act = lambda: pl.BlockSpec((H, tile_n), lambda i: (0, i))   # batch-tiled (H, N)
    col = lambda: pl.BlockSpec((H, 1), lambda i: (0, 0))        # resident (H, 1)

    cp_acc = pltpu.CompilerParams(dimension_semantics=("arbitrary",),
                                  vmem_limit_bytes=_VMEM_LIMIT)
    cp_par = pltpu.CompilerParams(dimension_semantics=("parallel",),
                                  vmem_limit_bytes=_VMEM_LIMIT)

    # phase 1: h1^T tiles + batch-global (sum, sumsq) of h1 ------------------
    h1t, s1, q1 = pl.pallas_call(
        _h1_stats_kernel,
        grid=(nt,),
        in_specs=[pl.BlockSpec((D, tile_n), lambda i: (0, i)),
                  pl.BlockSpec((H, D), lambda i: (0, 0))],
        out_specs=(act(), col(), col()),
        out_shape=(jax.ShapeDtypeStruct((H, N), jnp.float32),
                   jax.ShapeDtypeStruct((H, 1), jnp.float32),
                   jax.ShapeDtypeStruct((H, 1), jnp.float32)),
        compiler_params=cp_acc,
    )(xt, p["w1"])
    sc1, sh1 = _fold_bn(s1, q1, N, p["g1"], p["be1"])

    # phase 2: apply BN1+relu, Linear2+relu, accumulate h2 stats -------------
    h2t, s2, q2 = pl.pallas_call(
        _h2_stats_kernel,
        grid=(nt,),
        in_specs=[act(), col(), col(),
                  pl.BlockSpec((H, H), lambda i: (0, 0)), col()],
        out_specs=(act(), col(), col()),
        out_shape=(jax.ShapeDtypeStruct((H, N), jnp.float32),
                   jax.ShapeDtypeStruct((H, 1), jnp.float32),
                   jax.ShapeDtypeStruct((H, 1), jnp.float32)),
        compiler_params=cp_acc,
    )(h1t, sc1, sh1, p["w2"], p["b2"])
    sc2, sh2 = _fold_bn(s2, q2, N, p["g2"], p["be2"])

    # phase 3: BN2 + residual + final projection + squashed sigmoid ----------
    out = pl.pallas_call(
        functools.partial(_finalize_kernel, eps_off=eps_off, eps_scale=eps_scale),
        grid=(nt,),
        in_specs=[act(), act(), col(), col(), col(), col(), col(),
                  pl.BlockSpec((1, 1), lambda i: (0, 0))],
        out_specs=pl.BlockSpec((1, tile_n), lambda i: (0, i)),
        out_shape=jax.ShapeDtypeStruct((1, N), jnp.float32),
        compiler_params=cp_par,
    )(h1t, h2t, sc1, sh1, sc2, sh2, p["wf"], p["bf"])

    return out.reshape(N, 1)


def propensity_forward(x, params, epsilons=0.001, tile_n=None):
    """x: (N, input_dim) f32 -> (N, 1) propensity in (epsilons, 1 - epsilons)."""
    N, D = x.shape
    H = params["w1"].shape[0]
    eps_off = float(epsilons)
    eps_scale = 1.0 - 2.0 * float(epsilons)

    # Layout plumbing, not compute: put the batch on the lane axis.
    xt = x.T                                          # (D, N)

    if tile_n is None:
        if 4 * N * (D + 4 * H) <= _FUSED_VMEM_BUDGET:
            return _forward_fused(xt, params, eps_off, eps_scale)
        tile_n = _pick_tile(N)
    if N % tile_n != 0 or (tile_n != N and tile_n % 128 != 0):
        raise ValueError(f"tile_n={tile_n} must divide N={N} and be a multiple of 128")
    return _forward_tiled(xt, params, eps_off, eps_scale, tile_n)


# ----------------------------------------------------------------------------
# Synthetic parameters (PyTorch-native layouts: Linear weight = (out, in)),
# stored with per-feature vectors as (H, 1) columns for the transposed kernels.
# ----------------------------------------------------------------------------
def init_params(key, input_dim, hidden_dim):
    ks = jax.random.split(key, 10)
    s_in = 1.0 / jnp.sqrt(input_dim)
    s_h = 1.0 / jnp.sqrt(hidden_dim)
    u = lambda k, shape, s: jax.random.uniform(k, shape, jnp.float32, -s, s)
    return {
        "w1": u(ks[0], (hidden_dim, input_dim), s_in),   # initial_layers.weight
        "b1": u(ks[1], (hidden_dim, 1), s_in),           # dead under train-mode BN
        "g1": 1.0 + 0.1 * jax.random.normal(ks[2], (hidden_dim, 1), jnp.float32),
        "be1": 0.1 * jax.random.normal(ks[3], (hidden_dim, 1), jnp.float32),
        "w2": u(ks[4], (hidden_dim, hidden_dim), s_h),   # middle Linear.weight
        "b2": u(ks[5], (hidden_dim, 1), s_h),
        "g2": 1.0 + 0.1 * jax.random.normal(ks[6], (hidden_dim, 1), jnp.float32),
        "be2": 0.1 * jax.random.normal(ks[7], (hidden_dim, 1), jnp.float32),
        "wf": u(ks[8], (hidden_dim, 1), s_h),            # final_layer.weight^T
        "bf": u(ks[9], (1, 1), s_h),
    }


def propensity_forward_ref(x, p, epsilons=0.001):
    """Pure-JAX reference mirroring the PyTorch forward (training-mode BN)."""
    def bn(h, g, be):
        mu = jnp.mean(h, axis=0, keepdims=True)
        var = jnp.mean((h - mu) ** 2, axis=0, keepdims=True)
        return g[:, 0] * (h - mu) / jnp.sqrt(var + BN_EPS) + be[:, 0]

    h = jax.nn.relu(bn(x @ p["w1"].T + p["b1"][:, 0], p["g1"], p["be1"]))
    identity = h
    h = jax.nn.relu(h @ p["w2"].T + p["b2"][:, 0])
    h = jax.nn.relu(bn(h, p["g2"], p["be2"]))
    h = h + identity
    logit = h @ p["wf"] + p["bf"][0, 0]
    return epsilons + (1 - 2 * epsilons) * jax.nn.sigmoid(logit)


if __name__ == "__main__":
    N, INPUT_DIM, HIDDEN_DIM = 256, 16, 32

    key = jax.random.PRNGKey(0)
    kx, kp = jax.random.split(key)
    x = jax.random.normal(kx, (N, INPUT_DIM), jnp.float32)
    params = init_params(kp, INPUT_DIM, HIDDEN_DIM)

    ref = propensity_forward_ref(x, params, epsilons=0.001)

    # Small-batch path: single fused kernel (whole batch resident in VMEM).
    out_fused = jax.block_until_ready(propensity_forward(x, params, epsilons=0.001))
    # Large-batch path: batch-tiled 3-phase pipeline, forced here with 128-row
    # tiles so the grid / stats accumulators / lane-dense output are exercised.
    out_tiled = jax.block_until_ready(
        propensity_forward(x, params, epsilons=0.001, tile_n=128))

    assert out_fused.shape == (N, 1) and out_tiled.shape == (N, 1)
    assert jnp.allclose(out_fused, ref, atol=2e-4, rtol=2e-4)
    assert jnp.allclose(out_tiled, ref, atol=2e-4, rtol=2e-4)

    print("KERNEL_OK")
</pallas_src>

<mosaic_0001>
module attributes {stable_mosaic.version = 11 : i64} {
  func.func @_fused_kernel(%arg0: memref<16x256xf32, #tpu.memory_space<vmem>>, %arg1: memref<32x16xf32, #tpu.memory_space<vmem>>, %arg2: memref<32x1xf32, #tpu.memory_space<vmem>>, %arg3: memref<32x1xf32, #tpu.memory_space<vmem>>, %arg4: memref<32x32xf32, #tpu.memory_space<vmem>>, %arg5: memref<32x1xf32, #tpu.memory_space<vmem>>, %arg6: memref<32x1xf32, #tpu.memory_space<vmem>>, %arg7: memref<32x1xf32, #tpu.memory_space<vmem>>, %arg8: memref<32x1xf32, #tpu.memory_space<vmem>>, %arg9: memref<1x1xf32, #tpu.memory_space<vmem>>, %arg10: memref<1x256xf32, #tpu.memory_space<vmem>>) attributes {dimension_semantics = [], scalar_prefetch = 0 : i64, scratch_operands = 0 : i64, tpu.core_type = #tpu.core_type<tc>} {
    %c0 = arith.constant 0 : index
    %c0_0 = arith.constant 0 : index
    %0 = vector.load %arg1[%c0, %c0_0] : memref<32x16xf32, #tpu.memory_space<vmem>>, vector<32x16xf32>
    %c0_1 = arith.constant 0 : index
    %c0_2 = arith.constant 0 : index
    %1 = vector.load %arg0[%c0_1, %c0_2] : memref<16x256xf32, #tpu.memory_space<vmem>>, vector<16x256xf32>
    %cst = arith.constant dense<0.000000e+00> : vector<32x256xf32>
    %2 = tpu.matmul %0, %1, %cst {dimension_numbers = #tpu.dot_dimension_numbers<[1], [0], [0], [1], [0, 0, 1, 1], [], []>} : vector<32x16xf32>, vector<16x256xf32>, vector<32x256xf32> -> vector<32x256xf32>
    %cst_3 = arith.constant dense<0.000000e+00> : vector<32xf32>
    %3 = vector.multi_reduction <add>, %2, %cst_3 [1] : vector<32x256xf32> to vector<32xf32>
    %4 = vector.shape_cast %3 : vector<32xf32> to vector<32x1xf32>
    %cst_4 = arith.constant 3.906250e-03 : f32
    %5 = vector.broadcast %cst_4 : f32 to vector<32x1xf32>
    %6 = arith.mulf %4, %5 : vector<32x1xf32>
    %7 = arith.mulf %2, %2 : vector<32x256xf32>
    %cst_5 = arith.constant dense<0.000000e+00> : vector<32xf32>
    %8 = vector.multi_reduction <add>, %7, %cst_5 [1] : vector<32x256xf32> to vector<32xf32>
    %9 = vector.shape_cast %8 : vector<32xf32> to vector<32x1xf32>
    %cst_6 = arith.constant 3.906250e-03 : f32
    %10 = vector.broadcast %cst_6 : f32 to vector<32x1xf32>
    %11 = arith.mulf %9, %10 : vector<32x1xf32>
    %c0_7 = arith.constant 0 : index
    %c0_8 = arith.constant 0 : index
    %12 = vector.load %arg2[%c0_7, %c0_8] : memref<32x1xf32, #tpu.memory_space<vmem>>, vector<32x1xf32>
    %13 = arith.mulf %6, %6 : vector<32x1xf32>
    %14 = arith.subf %11, %13 : vector<32x1xf32>
    %cst_9 = arith.constant 9.99999974E-6 : f32
    %15 = vector.broadcast %cst_9 : f32 to vector<32x1xf32>
    %16 = arith.addf %14, %15 : vector<32x1xf32>
    %17 = math.rsqrt %16 : vector<32x1xf32>
    %18 = arith.mulf %12, %17 : vector<32x1xf32>
    %c0_10 = arith.constant 0 : index
    %c0_11 = arith.constant 0 : index
    %19 = vector.load %arg3[%c0_10, %c0_11] : memref<32x1xf32, #tpu.memory_space<vmem>>, vector<32x1xf32>
    %20 = arith.mulf %6, %18 : vector<32x1xf32>
    %21 = arith.subf %19, %20 : vector<32x1xf32>
    %22 = vector.broadcast %18 : vector<32x1xf32> to vector<32x256xf32>
    %23 = arith.mulf %2, %22 : vector<32x256xf32>
    %24 = vector.broadcast %21 : vector<32x1xf32> to vector<32x256xf32>
    %25 = arith.addf %23, %24 : vector<32x256xf32>
    %cst_12 = arith.constant 0.000000e+00 : f32
    %26 = vector.broadcast %cst_12 : f32 to vector<32x256xf32>
    %27 = arith.maximumf %25, %26 : vector<32x256xf32>
    %c0_13 = arith.constant 0 : index
    %c0_14 = arith.constant 0 : index
    %28 = vector.load %arg4[%c0_13, %c0_14] : memref<32x32xf32, #tpu.memory_space<vmem>>, vector<32x32xf32>
    %cst_15 = arith.constant dense<0.000000e+00> : vector<32x256xf32>
    %29 = tpu.matmul %28, %27, %cst_15 {dimension_numbers = #tpu.dot_dimension_numbers<[1], [0], [0], [1], [0, 0, 1, 1], [], []>} : vector<32x32xf32>, vector<32x256xf32>, vector<32x256xf32> -> vector<32x256xf32>
    %c0_16 = arith.constant 0 : index
    %c0_17 = arith.constant 0 : index
    %30 = vector.load %arg5[%c0_16, %c0_17] : memref<32x1xf32, #tpu.memory_space<vmem>>, vector<32x1xf32>
    %31 = vector.broadcast %30 : vector<32x1xf32> to vector<32x256xf32>
    %32 = arith.addf %29, %31 : vector<32x256xf32>
    %cst_18 = arith.constant 0.000000e+00 : f32
    %33 = vector.broadcast %cst_18 : f32 to vector<32x256xf32>
    %34 = arith.maximumf %32, %33 : vector<32x256xf32>
    %cst_19 = arith.constant dense<0.000000e+00> : vector<32xf32>
    %35 = vector.multi_reduction <add>, %34, %cst_19 [1] : vector<32x256xf32> to vector<32xf32>
    %36 = vector.shape_cast %35 : vector<32xf32> to vector<32x1xf32>
    %cst_20 = arith.constant 3.906250e-03 : f32
    %37 = vector.broadcast %cst_20 : f32 to vector<32x1xf32>
    %38 = arith.mulf %36, %37 : vector<32x1xf32>
    %39 = arith.mulf %34, %34 : vector<32x256xf32>
    %cst_21 = arith.constant dense<0.000000e+00> : vector<32xf32>
    %40 = vector.multi_reduction <add>, %39, %cst_21 [1] : vector<32x256xf32> to vector<32xf32>
    %41 = vector.shape_cast %40 : vector<32xf32> to vector<32x1xf32>
    %cst_22 = arith.constant 3.906250e-03 : f32
    %42 = vector.broadcast %cst_22 : f32 to vector<32x1xf32>
    %43 = arith.mulf %41, %42 : vector<32x1xf32>
    %c0_23 = arith.constant 0 : index
    %c0_24 = arith.constant 0 : index
    %44 = vector.load %arg6[%c0_23, %c0_24] : memref<32x1xf32, #tpu.memory_space<vmem>>, vector<32x1xf32>
    %45 = arith.mulf %38, %38 : vector<32x1xf32>
    %46 = arith.subf %43, %45 : vector<32x1xf32>
    %cst_25 = arith.constant 9.99999974E-6 : f32
    %47 = vector.broadcast %cst_25 : f32 to vector<32x1xf32>
    %48 = arith.addf %46, %47 : vector<32x1xf32>
    %49 = math.rsqrt %48 : vector<32x1xf32>
    %50 = arith.mulf %44, %49 : vector<32x1xf32>
    %c0_26 = arith.constant 0 : index
    %c0_27 = arith.constant 0 : index
    %51 = vector.load %arg7[%c0_26, %c0_27] : memref<32x1xf32, #tpu.memory_space<vmem>>, vector<32x1xf32>
    %52 = arith.mulf %38, %50 : vector<32x1xf32>
    %53 = arith.subf %51, %52 : vector<32x1xf32>
    %54 = vector.broadcast %50 : vector<32x1xf32> to vector<32x256xf32>
    %55 = arith.mulf %34, %54 : vector<32x256xf32>
    %56 = vector.broadcast %53 : vector<32x1xf32> to vector<32x256xf32>
    %57 = arith.addf %55, %56 : vector<32x256xf32>
    %cst_28 = arith.constant 0.000000e+00 : f32
    %58 = vector.broadcast %cst_28 : f32 to vector<32x256xf32>
    %59 = arith.maximumf %57, %58 : vector<32x256xf32>
    %60 = arith.addf %59, %27 : vector<32x256xf32>
    %c0_29 = arith.constant 0 : index
    %c0_30 = arith.constant 0 : index
    %61 = vector.load %arg8[%c0_29, %c0_30] : memref<32x1xf32, #tpu.memory_space<vmem>>, vector<32x1xf32>
    %62 = vector.broadcast %61 : vector<32x1xf32> to vector<32x256xf32>
    %63 = arith.mulf %60, %62 : vector<32x256xf32>
    %cst_31 = arith.constant dense<0.000000e+00> : vector<256xf32>
    %64 = vector.multi_reduction <add>, %63, %cst_31 [0] : vector<32x256xf32> to vector<256xf32>
    %65 = vector.shape_cast %64 : vector<256xf32> to vector<1x256xf32>
    %c0_32 = arith.constant 0 : index
    %c0_33 = arith.constant 0 : index
    %66 = vector.load %arg9[%c0_32, %c0_33] : memref<1x1xf32, #tpu.memory_space<vmem>>, vector<1x1xf32>
    %67 = vector.broadcast %66 : vector<1x1xf32> to vector<1x256xf32>
    %68 = arith.addf %65, %67 : vector<1x256xf32>
    %cst_34 = arith.constant 0.000000e+00 : f32
    %69 = vector.broadcast %cst_34 : f32 to vector<1x256xf32>
    %70 = arith.subf %69, %68 : vector<1x256xf32>
    %71 = math.exp %70 : vector<1x256xf32>
    %cst_35 = arith.constant 1.000000e+00 : f32
    %72 = vector.broadcast %cst_35 : f32 to vector<1x256xf32>
    %73 = arith.addf %72, %71 : vector<1x256xf32>
    %74 = tpu.reciprocal %73 : vector<1x256xf32> -> vector<1x256xf32>
    %cst_36 = arith.constant 9.980000e-01 : f32
    %75 = vector.broadcast %cst_36 : f32 to vector<1x256xf32>
    %76 = arith.mulf %75, %74 : vector<1x256xf32>
    %cst_37 = arith.constant 1.000000e-03 : f32
    %77 = vector.broadcast %cst_37 : f32 to vector<1x256xf32>
    %78 = arith.addf %77, %76 : vector<1x256xf32>
    %c0_38 = arith.constant 0 : index
    %c0_39 = arith.constant 0 : index
    %79 = vector.load %arg10[%c0_38, %c0_39] : memref<1x256xf32, #tpu.memory_space<vmem>>, vector<1x256xf32>
    tpu.vector_store %arg10[%c0_38, %c0_39], %78 {strides = array<i32>} : memref<1x256xf32, #tpu.memory_space<vmem>>, vector<1x256xf32>,
    return
  }
}

</mosaic_0001>

<bundles_post_ra>
// kernel: tpu_custom_call.1
= control target key start
LH: loop header
LB: loop body
LE: loop exit
PB: predicated region body
PF: predicated region fallthrough
CT: control target
= control target key end

     0   :  { %s1103_s0 = inlined_call_operand.vmem [shape: f32[16,256], index: 0, kind: input, shape index: {}]   ;;  %s1104_s1 = inlined_call_operand.vmem [shape: f32[32,16], index: 1, kind: input, shape index: {}]   ;;  %s1105_s2 = inlined_call_operand.vmem [shape: f32[32,1], index: 2, kind: input, shape index: {}]   ;;  %s1106_s3 = inlined_call_operand.vmem [shape: f32[32,1], index: 3, kind: input, shape index: {}]   ;;  %s1107_s4 = inlined_call_operand.vmem [shape: f32[32,32], index: 4, kind: input, shape index: {}]   ;;  %s1108_s5 = inlined_call_operand.vmem [shape: f32[32,1], index: 5, kind: input, shape index: {}]   ;;  %s1109_s6 = inlined_call_operand.vmem [shape: f32[32,1], index: 6, kind: input, shape index: {}]   ;;  %s1110_s7 = inlined_call_operand.vmem [shape: f32[32,1], index: 7, kind: input, shape index: {}]   ;;  %s1111_s8 = inlined_call_operand.vmem [shape: f32[32,1], index: 8, kind: input, shape index: {}]   ;;  %s1112_s9 = inlined_call_operand.<no memory space> [shape: f32[1,1], index: 9, kind: input, shape index: {}]   ;;  %s1113_s10 = inlined_call_operand.hbm [shape: f32[1,256], index: 10, kind: output, shape index: {}]  }
   0x1   :  { %v15_v0 = vstv %s1112_s9 }
   0x2   :  { %16 = vst [vmem:[#allocation2] sm:$0x1] %v15_v0 }
   0x3   :  { %v43_v1 = vld [vmem:[%s1103_s0 + $0x8] sm:$0xff]  ;;  %v45_v2 = vld [vmem:[%s1103_s0 + $0x18] sm:$0xff]  ;;  %v42_v3 = vld [vmem:[%s1103_s0] sm:$0xff]  ;;  %v761_v6 = vmov 0.0  }
   0x4   :  { %v695_v4 = vpack.c.bf16 %v45_v2, %v43_v1  ;;  %v44_v5 = vld [vmem:[%s1103_s0 + $0x10] sm:$0xff]  ;;  %123 = vmatprep.mubr.f32.mxu0 %v761_v6  ;;  %393 = vmatprep.mubr.f32.mxu1 %v761_v6 }
   0x5   :  { %v697_v7 = vpack.c.bf16 %v44_v5, %v42_v3 }
   0x6   :  { %17 = vsyncpa [#allocation4], 0  ;;  %696 = vmatprep.subr.bf16.mxu0 %v695_v4  ;;  %v38_v8 = vld [vmem:[%s1104_s1] sm:$0xff]  ;;  %vm46_vm0 = vcmask 130048   ;;  %v39_v9 = vld [vmem:[%s1104_s1 + $0x8] sm:$0xff]  ;;  %v762_v36 = vmov 0  }
   0x7   :  { %698 = vmatpush1.bf16.msra.mxu0 %v697_v7  ;;  %v40_v10 = vld [vmem:[%s1104_s1 + $0x10] sm:$0xff]  ;;  %v41_v11 = vld [vmem:[%s1104_s1 + $0x18] sm:$0xff]  ;;  %711 = vset.pattern.permute.xlu0 %v762_v36  ;;  %v188_v62 = vld [vmem:[%s1105_s2] sm:$0xff]  ;;  %vm316_vm1 = vcmask 261120  }
   0x8   :  { %712 = vset.pattern.permute.xlu1 %v762_v36  ;;  %v189_v3 = vld [vmem:[%s1105_s2 + $0x8] sm:$0xff]  ;;  %v292_v36 = vld [vmem:[%s1108_s5] sm:$0xff] }
   0x9   :  { %v293_v7 = vld [vmem:[%s1108_s5 + $0x8] sm:$0xff] }
   0xa   :  { %687 = vmatmul.mubr.msk.f32.vlgmr.msra.gmra.mrb[0].mxu0 %vm46_vm0, %v38_v8 }
   0xb   :  { %129 = vmatprep.mubr.f32.mxu0 %v761_v6 }
   0xe   :  { %688 = vmatmul.mubr.msk.f32.gmra.mrb[2].mxu0 %vm46_vm0, %v39_v9 }
   0xf   :  { %135 = vmatprep.mubr.f32.mxu0 %v761_v6 }
  0x12   :  { %689 = vmatmul.mubr.msk.f32.gmra.mrb[4].mxu0 %vm46_vm0, %v40_v10  ;;  %v212_v10 = vld [vmem:[%s1106_s3] sm:$0xff] }
  0x13   :  { %141 = vmatprep.mubr.f32.mxu0 %v761_v6 }
  0x16   :  { %690 = vmatmul.mubr.msk.f32.gmra.mrb[6].mxu0 %vm46_vm0, %v41_v11  ;;  %v295_v11 = vld [vmem:[%s1108_s5 + $0x18] sm:$0xff] }
  0xdd   :  { %v852_v12 = vpop.f32.mrb[0].mxu0 }
  0xde   :  { %v854_v13 = vpop.f32.mrb[1].mxu0  ;;  %v164_v14 = vmul.f32 %v852_v12, %v852_v12 }
  0xdf   :  { %v148_v15 = vadd.f32 %v854_v13, %v852_v12  ;;  %v165_v16 = vmul.f32 %v854_v13, %v854_v13 }
  0xe1   :  { %149 = vadd.xlane.f32.xlu0 %v148_v15  ;;  %v862_v17 = vpop.f32.mrb[2].mxu0  ;;  %v172_v18 = vadd.f32 %v165_v16, %v164_v14  ;;  %v213_v16 = vld [vmem:[%s1106_s3 + $0x8] sm:$0xff] }
  0xe2   :  { %v864_v19 = vpop.f32.mrb[3].mxu0  ;;  %v166_v20 = vmul.f32 %v862_v17, %v862_v17 }
  0xe3   :  { %173 = vadd.xlane.f32.xlu1 %v172_v18  ;;  %v151_v21 = vadd.f32 %v864_v19, %v862_v17  ;;  %v167_v22 = vmul.f32 %v864_v19, %v864_v19 }
  0xe5   :  { %152 = vadd.xlane.f32.xlu0 %v151_v21  ;;  %v872_v23 = vpop.f32.mrb[4].mxu0  ;;  %v175_v24 = vadd.f32 %v167_v22, %v166_v20  ;;  %v190_v21 = vld [vmem:[%s1105_s2 + $0x10] sm:$0xff] }
  0xe6   :  { %v874_v25 = vpop.f32.mrb[5].mxu0  ;;  %v168_v26 = vmul.f32 %v872_v23, %v872_v23 }
  0xe7   :  { %176 = vadd.xlane.f32.xlu1 %v175_v24  ;;  %v154_v27 = vadd.f32 %v874_v25, %v872_v23  ;;  %v169_v28 = vmul.f32 %v874_v25, %v874_v25 }
  0xe9   :  { %155 = vadd.xlane.f32.xlu0 %v154_v27  ;;  %v882_v29 = vpop.f32.mrb[6].mxu0  ;;  %v178_v30 = vadd.f32 %v169_v28, %v168_v26  ;;  %v191_v26 = vld [vmem:[%s1105_s2 + $0x18] sm:$0xff] }
  0xea   :  { %v884_v31 = vpop.f32.mrb[7].mxu0  ;;  %v170_v32 = vmul.f32 %v882_v29, %v882_v29 }
  0xeb   :  { %v171_v33 = vmul.f32 %v884_v31, %v884_v31  ;;  %v157_v34 = vadd.f32 %v884_v31, %v882_v29 }
  0xed   :  { %179 = vadd.xlane.f32.xlu0 %v178_v30  ;;  %158 = vadd.xlane.f32.xlu1 %v157_v34  ;;  %v181_v35 = vadd.f32 %v171_v33, %v170_v32  ;;  %v214_v30 = vld [vmem:[%s1106_s3 + $0x10] sm:$0xff]  ;;  %v215_v34 = vld [vmem:[%s1106_s3 + $0x18] sm:$0xff] }
  0xf1   :  { %182 = vadd.xlane.f32.xlu1 %v181_v35 }
 0x16e   :  { %v150_v37 = vpop.xlane.xlu0 %149 }
 0x16f   :  { %v160_v38 = vmul.f32 0.00390625, %v150_v37  ;;  %v294_v37 = vld [vmem:[%s1108_s5 + $0x10] sm:$0xff] }
 0x170   :  { %v174_v39 = vpop.xlane.xlu1 %173 }
 0x171   :  { %v192_v40 = vmul.f32 %v160_v38, %v160_v38  ;;  %v184_v41 = vmul.f32 0.00390625, %v174_v39 }
 0x172   :  { %v153_v42 = vpop.xlane.xlu0 %152 }
 0x173   :  { %v196_v43 = vsub.f32 %v184_v41, %v192_v40  ;;  %v161_v44 = vmul.f32 0.00390625, %v153_v42 }
 0x174   :  { %v177_v45 = vpop.xlane.xlu1 %176 }
 0x175   :  { %v200_v46 = vadd.f32 1e-05, %v196_v43  ;;  %v193_v47 = vmul.f32 %v161_v44, %v161_v44  ;;  %v185_v48 = vmul.f32 0.00390625, %v177_v45 }
 0x176   :  { %v156_v49 = vpop.xlane.xlu0 %155 }
 0x177   :  { %713 = vrsqrt.f32 %v200_v46  ;;  %v197_v50 = vsub.f32 %v185_v48, %v193_v47  ;;  %v162_v51 = vmul.f32 0.00390625, %v156_v49 }
 0x179   :  { %v201_v52 = vadd.f32 1e-05, %v197_v50  ;;  %v194_v53 = vmul.f32 %v162_v51, %v162_v51 }
 0x17a   :  { %v180_v54 = vpop.xlane.xlu0 %179  ;;  %v159_v55 = vpop.xlane.xlu1 %158 }
 0x17b   :  { %715 = vrsqrt.f32 %v201_v52  ;;  %v186_v56 = vmul.f32 0.00390625, %v180_v54  ;;  %v163_v57 = vmul.f32 0.00390625, %v159_v55 }
 0x17d   :  { %v198_v58 = vsub.f32 %v186_v56, %v194_v53  ;;  %v195_v59 = vmul.f32 %v163_v57, %v163_v57 }
 0x17e   :  { %v183_v60 = vpop.xlane.xlu1 %182 }
 0x17f   :  { %v187_v61 = vmul.f32 0.00390625, %v183_v60  ;;  %v202_v0 = vadd.f32 1e-05, %v198_v58 }
 0x181   :  { %v714_v63 = vpop.eup %713  ;;  %v199_v1 = vsub.f32 %v187_v61, %v195_v59  ;;  %717 = vrsqrt.f32 %v202_v0 }
 0x182   :  { %v208_v2 = vmul.f32 %v714_v63, %v188_v62 }
 0x183   :  { %v203_v5 = vadd.f32 1e-05, %v199_v1 }
 0x184   :  { %226 = vperm.xlu0 %711, %v208_v2   ;;  %v216_v9 = vmul.f32 %v208_v2, %v160_v38  ;;  %v288_v2 = vld [vmem:[%s1107_s4] sm:$0xff] }
 0x185   :  { %v716_v4 = vpop.eup %715  ;;  %719 = vrsqrt.f32 %v203_v5  ;;  %v291_v5 = vld [vmem:[%s1107_s4 + $0x18] sm:$0xff] }
 0x186   :  { %v209_v8 = vmul.f32 %v716_v4, %v189_v3  ;;  %v220_v14 = vsub.f32 %v212_v10, %v216_v9  ;;  %v289_v3 = vld [vmem:[%s1107_s4 + $0x8] sm:$0xff]  ;;  %v290_v4 = vld [vmem:[%s1107_s4 + $0x10] sm:$0xff] }
 0x188   :  { %231 = vperm.xlu1 %712, %v209_v8   ;;  %303 = vperm.xlu0 %711, %v293_v7   ;;  %v217_v15 = vmul.f32 %v209_v8, %v161_v44 }
 0x18a   :  { %v221_v18 = vsub.f32 %v213_v16, %v217_v15 }
 0x18b   :  { %v718_v20 = vpop.eup %717 }
 0x18c   :  { %254 = vperm.xlu1 %712, %v220_v14   ;;  %313 = vperm.xlu0 %711, %v295_v11   ;;  %v210_v22 = vmul.f32 %v718_v20, %v190_v21 }
 0x18e   :  { %v218_v28 = vmul.f32 %v210_v22, %v162_v51 }
 0x18f   :  { %v720_v24 = vpop.eup %719 }
 0x190   :  { %259 = vperm.xlu1 %712, %v221_v18   ;;  %v211_v27 = vmul.f32 %v720_v24, %v191_v26  ;;  %v222_v32 = vsub.f32 %v214_v30, %v218_v28 }
 0x192   :  { %v219_v33 = vmul.f32 %v211_v27, %v163_v57 }
 0x194   :  { %236 = vperm.xlu1 %712, %v210_v22   ;;  %v223_v35 = vsub.f32 %v215_v34, %v219_v33 }
 0x198   :  { %241 = vperm.xlu1 %712, %v211_v27  }
 0x19c   :  { %264 = vperm.xlu1 %712, %v222_v32  }
 0x1a0   :  { %269 = vperm.xlu1 %712, %v223_v35  }
 0x1a4   :  { %298 = vperm.xlu1 %712, %v292_v36  }
 0x1a8   :  { %308 = vperm.xlu1 %712, %v294_v37  }
 0x203   :  { %v227_v39 = vpop.permute.xlu0 %226 }
 0x204   :  { %v244_v41 = vmul.f32 %v227_v39, %v852_v12  ;;  %v245_v42 = vmul.f32 %v227_v39, %v854_v13 }
 0x207   :  { %v232_v38 = vpop.permute.xlu1 %231  ;;  %v304_v15 = vpop.permute.xlu0 %303 }
 0x208   :  { %v246_v43 = vmul.f32 %v232_v38, %v862_v17  ;;  %v247_v44 = vmul.f32 %v232_v38, %v864_v19 }
 0x20b   :  { %v255_v40 = vpop.permute.xlu1 %254 }
 0x20c   :  { %v932_v45 = vadd.f32 %v255_v40, %v244_v41  ;;  %v934_v46 = vadd.f32 %v255_v40, %v245_v42  ;;  %v314_v40 = vpop.permute.xlu0 %313 }
 0x20e   :  { %v280_v50 = vmax.f32 %v932_v45, 0.0  ;;  %v281_v12 = vmax.f32 %v934_v46, 0.0 }
 0x20f   :  { %v260_v47 = vpop.permute.xlu1 %259 }
 0x210   :  { %v936_v48 = vadd.f32 %v260_v47, %v246_v43  ;;  %v938_v49 = vadd.f32 %v260_v47, %v247_v44 }
 0x212   :  { %v282_v51 = vmax.f32 %v936_v48, 0.0  ;;  %v283_v13 = vmax.f32 %v938_v49, 0.0 }
 0x213   :  { %v237_v17 = vpop.permute.xlu1 %236 }
 0x214   :  { %v699_v19 = vpack.c.bf16 %v283_v13, %v281_v12  ;;  %v701_v52 = vpack.c.bf16 %v282_v51, %v280_v50  ;;  %v248_v55 = vmul.f32 %v237_v17, %v872_v23  ;;  %v249_v56 = vmul.f32 %v237_v17, %v874_v25 }
 0x216   :  { %700 = vmatprep.subr.bf16.mxu1 %v699_v19 }
 0x217   :  { %702 = vmatpush1.bf16.msra.mxu1 %v701_v52  ;;  %v242_v53 = vpop.permute.xlu1 %241 }
 0x218   :  { %v250_v57 = vmul.f32 %v242_v53, %v882_v29  ;;  %v251_v58 = vmul.f32 %v242_v53, %v884_v31 }
 0x21b   :  { %v265_v54 = vpop.permute.xlu1 %264 }
 0x21c   :  { %v956_v59 = vadd.f32 %v265_v54, %v248_v55  ;;  %v958_v60 = vadd.f32 %v265_v54, %v249_v56 }
 0x21e   :  { %v284_v0 = vmax.f32 %v956_v59, 0.0  ;;  %v285_v1 = vmax.f32 %v958_v60, 0.0  ;;  %v630_v60 = vlaneseq }
 0x21f   :  { %v270_v61 = vpop.permute.xlu1 %269 }
 0x220   :  { %v960_v62 = vadd.f32 %v270_v61, %v250_v57  ;;  %v962_v63 = vadd.f32 %v270_v61, %v251_v58  ;;  %vm670_vm2 = vcmp.lt.s32.totalorder %v630_v60, 256 }
 0x222   :  { %v286_v23 = vmax.f32 %v960_v62, 0.0  ;;  %v287_v25 = vmax.f32 %v962_v63, 0.0 }
 0x223   :  { %v299_v7 = vpop.permute.xlu1 %298 }
 0x224   :  { %v703_v29 = vpack.c.bf16 %v287_v25, %v285_v1  ;;  %v705_v31 = vpack.c.bf16 %v286_v23, %v284_v0 }
 0x226   :  { %704 = vmatprep.subr.bf16.mxu1 %v703_v29 }
 0x227   :  { %706 = vmatpush1.bf16.msra.mxu1 %v705_v31  ;;  %v309_v28 = vpop.permute.xlu1 %308 }
 0x22a   :  { %691 = vmatmul.mubr.msk.f32.vlgmr.msra.gmra.mrb[0].mxu1 %vm316_vm1, %v288_v2 }
 0x22b   :  { %399 = vmatprep.mubr.f32.mxu1 %v761_v6 }
 0x22e   :  { %692 = vmatmul.mubr.msk.f32.gmra.mrb[2].mxu1 %vm316_vm1, %v289_v3 }
 0x22f   :  { %405 = vmatprep.mubr.f32.mxu1 %v761_v6 }
 0x232   :  { %693 = vmatmul.mubr.msk.f32.gmra.mrb[4].mxu1 %vm316_vm1, %v290_v4 }
 0x233   :  { %411 = vmatprep.mubr.f32.mxu1 %v761_v6 }
 0x236   :  { %694 = vmatmul.mubr.msk.f32.gmra.mrb[6].mxu1 %vm316_vm1, %v291_v5 }
 0x2fd   :  { %v395_v8 = vpop.f32.mrb[0].mxu1 }
 0x2fe   :  { %v396_v9 = vadd.f32 %v395_v8, %v299_v7  ;;  %v397_v10 = vpop.f32.mrb[1].mxu1 }
 0x2ff   :  { %v398_v11 = vadd.f32 %v397_v10, %v299_v7 }
 0x300   :  { %v991_v14 = vmax.f32 %v396_v9, 0.0 }
 0x301   :  { %v993_v16 = vmax.f32 %v398_v11, 0.0  ;;  %v401_v18 = vpop.f32.mrb[2].mxu1 }
 0x302   :  { %v402_v20 = vadd.f32 %v401_v18, %v304_v15  ;;  %v403_v21 = vpop.f32.mrb[3].mxu1  ;;  %v442_v6 = vmul.f32 %v991_v14, %v991_v14 }
 0x303   :  { %v404_v22 = vadd.f32 %v403_v21, %v304_v15  ;;  %v426_v24 = vadd.f32 %v993_v16, %v991_v14  ;;  %v443_v26 = vmul.f32 %v993_v16, %v993_v16 }
 0x304   :  { %v1001_v27 = vmax.f32 %v402_v20, 0.0 }
 0x305   :  { %v1003_v30 = vmax.f32 %v404_v22, 0.0  ;;  %v407_v32 = vpop.f32.mrb[4].mxu1  ;;  %427 = vadd.xlane.f32.xlu1 %v426_v24  ;;  %v450_v35 = vadd.f32 %v443_v26, %v442_v6 }
 0x306   :  { %v408_v33 = vadd.f32 %v407_v32, %v309_v28  ;;  %v409_v34 = vpop.f32.mrb[5].mxu1  ;;  %v444_v38 = vmul.f32 %v1001_v27, %v1001_v27 }
 0x307   :  { %v410_v36 = vadd.f32 %v409_v34, %v309_v28  ;;  %v429_v37 = vadd.f32 %v1003_v30, %v1001_v27  ;;  %v445_v39 = vmul.f32 %v1003_v30, %v1003_v30 }
 0x308   :  { %v1011_v42 = vmax.f32 %v408_v33, 0.0 }
 0x309   :  { %v413_v41 = vpop.f32.mrb[6].mxu1  ;;  %430 = vadd.xlane.f32.xlu0 %v429_v37  ;;  %451 = vadd.xlane.f32.xlu1 %v450_v35  ;;  %v1013_v43 = vmax.f32 %v410_v36, 0.0  ;;  %v453_v19 = vadd.f32 %v445_v39, %v444_v38 }
 0x30a   :  { %v414_v44 = vadd.f32 %v413_v41, %v314_v40  ;;  %v415_v47 = vpop.f32.mrb[7].mxu1  ;;  %v446_v55 = vmul.f32 %v1011_v42, %v1011_v42 }
 0x30b   :  { %v416_v17 = vadd.f32 %v415_v47, %v314_v40  ;;  %v432_v54 = vadd.f32 %v1013_v43, %v1011_v42  ;;  %v447_v61 = vmul.f32 %v1013_v43, %v1013_v43  ;;  %v466_v40 = vld [vmem:[%s1109_s6] sm:$0xff] }
 0x30c   :  { %v1015_v52 = vmax.f32 %v414_v44, 0.0 }
 0x30d   :  { %v1017_v53 = vmax.f32 %v416_v17, 0.0  ;;  %454 = vadd.xlane.f32.xlu0 %v453_v19  ;;  %v456_v31 = vadd.f32 %v447_v61, %v446_v55  ;;  %v467_v19 = vld [vmem:[%s1109_s6 + $0x8] sm:$0xff]  ;;  %v468_v61 = vld [vmem:[%s1109_s6 + $0x10] sm:$0xff] }
 0x30e   :  { %v448_v57 = vmul.f32 %v1015_v52, %v1015_v52 }
 0x30f   :  { %v435_v56 = vadd.f32 %v1017_v53, %v1015_v52  ;;  %v449_v58 = vmul.f32 %v1017_v53, %v1017_v53 }
 0x311   :  { %436 = vadd.xlane.f32.xlu1 %v435_v56  ;;  %433 = vadd.xlane.f32.xlu0 %v432_v54  ;;  %v459_v29 = vadd.f32 %v449_v58, %v448_v57  ;;  %v490_v54 = vld [vmem:[%s1110_s7] sm:$0xff] }
 0x315   :  { %460 = vadd.xlane.f32.xlu1 %v459_v29  ;;  %457 = vadd.xlane.f32.xlu0 %v456_v31  ;;  %v469_v29 = vld [vmem:[%s1109_s6 + $0x18] sm:$0xff] }
 0x392   :  { %v428_v2 = vpop.xlane.xlu1 %427 }
 0x393   :  { %v438_v3 = vmul.f32 0.00390625, %v428_v2 }
 0x395   :  { %v470_v7 = vmul.f32 %v438_v3, %v438_v3 }
 0x396   :  { %v431_v4 = vpop.xlane.xlu0 %430  ;;  %v452_v5 = vpop.xlane.xlu1 %451 }
 0x397   :  { %v439_v8 = vmul.f32 0.00390625, %v431_v4  ;;  %v462_v9 = vmul.f32 0.00390625, %v452_v5 }
 0x399   :  { %v474_v10 = vsub.f32 %v462_v9, %v470_v7  ;;  %v471_v15 = vmul.f32 %v439_v8, %v439_v8  ;;  %v493_v9 = vld [vmem:[%s1110_s7 + $0x18] sm:$0xff] }
 0x39a   :  { %v455_v11 = vpop.xlane.xlu0 %454 }
 0x39b   :  { %v478_v18 = vadd.f32 1e-05, %v474_v10  ;;  %v463_v20 = vmul.f32 0.00390625, %v455_v11 }
 0x39d   :  { %721 = vrsqrt.f32 %v478_v18  ;;  %v475_v21 = vsub.f32 %v463_v20, %v471_v15  ;;  %v492_v20 = vld [vmem:[%s1110_s7 + $0x10] sm:$0xff] }
 0x39e   :  { %v434_v6 = vpop.xlane.xlu0 %433  ;;  %v437_v22 = vpop.xlane.xlu1 %436 }
 0x39f   :  { %v479_v24 = vadd.f32 1e-05, %v475_v21  ;;  %v440_v26 = vmul.f32 0.00390625, %v434_v6  ;;  %v441_v28 = vmul.f32 0.00390625, %v437_v22  ;;  %v575_v21 = vld [vmem:[%s1111_s8 + $0x8] sm:$0xff]  ;;  %v574_v6 = vld [vmem:[%s1111_s8] sm:$0xff] }
 0x3a0   :  { %v577_v22 = vld [vmem:[%s1111_s8 + $0x18] sm:$0xff] }
 0x3a1   :  { %723 = vrsqrt.f32 %v479_v24  ;;  %v472_v34 = vmul.f32 %v440_v26, %v440_v26  ;;  %v473_v35 = vmul.f32 %v441_v28, %v441_v28  ;;  %v576_v24 = vld [vmem:[%s1111_s8 + $0x10] sm:$0xff]  ;;  %s764_s8 = smov [#allocation3]  }
 0x3a2   :  { %v458_v32 = vpop.xlane.xlu0 %457  ;;  %v461_v33 = vpop.xlane.xlu1 %460  ;;  %s679_s29 = sshll.u32 %s764_s8, 4  ;;  %s680_s29 = int_to_ptr.vmem [resolvable:$true] %s679_s29 }
 0x3a3   :  { %v464_v36 = vmul.f32 0.00390625, %v458_v32  ;;  %v465_v37 = vmul.f32 0.00390625, %v461_v33  ;;  %s737_s30 = scalar_lea.vmem %s680_s29, 32  ;;  %p742_p1 = scmp.lt.s32.totalorder %s680_s29, %s680_s29 }
 0x3a4   :  { %p738_p0 = scmp.ne.s32.totalorder %s680_s29, %s737_s30  ;;  %p743_p2 = scmp.lt.s32.totalorder %s737_s30, %s737_s30 }
 0x3a5   :  { %v476_v38 = vsub.f32 %v464_v36, %v472_v34  ;;  %v477_v39 = vsub.f32 %v465_v37, %v473_v35 }
 0x3a6   :  { %p744_p3 = por %p743_p2, %p742_p1 }
 0x3a7   :  { %v722_v41 = vpop.eup %721  ;;  %v480_v44 = vadd.f32 1e-05, %v476_v38  ;;  %v481_v47 = vadd.f32 1e-05, %v477_v39 }
 0x3a8   :  { %v486_v17 = vmul.f32 %v722_v41, %v466_v40  ;;  %p745_p4 = pnand %p744_p3, %p738_p0 }
 0x3a9   :  { %725 = vrsqrt.f32 %v480_v44 }
 0x3aa   :  { %727 = vrsqrt.f32 %v481_v47  ;;  %504 = vperm.xlu0 %711, %v486_v17   ;;  %v494_v55 = vmul.f32 %v486_v17, %v438_v3  ;;  %v491_v3 = vld [vmem:[%s1110_s7 + $0x8] sm:$0xff] }
 0x3ab   :  { %v724_v56 = vpop.eup %723 }
 0x3ac   :  { %v487_v57 = vmul.f32 %v724_v56, %v467_v19  ;;  %v498_v58 = vsub.f32 %v490_v54, %v494_v55 }
 0x3ae   :  { %509 = vperm.xlu1 %712, %v487_v57   ;;  %532 = vperm.xlu0 %711, %v498_v58   ;;  %v495_v5 = vmul.f32 %v487_v57, %v439_v8 }
 0x3b0   :  { %v499_v11 = vsub.f32 %v491_v3, %v495_v5 }
 0x3b3   :  { %v726_v31 = vpop.eup %725 }
 0x3b4   :  { %v728_v2 = vpop.eup %727  ;;  %v488_v4 = vmul.f32 %v726_v31, %v468_v61 }
 0x3b5   :  { %v489_v7 = vmul.f32 %v728_v2, %v469_v29 }
 0x3b6   :  { %514 = vperm.xlu1 %712, %v488_v4   ;;  %v496_v15 = vmul.f32 %v488_v4, %v440_v26  ;;  %v624_v26 = vld [vmem:[#allocation2] sm:$0x1] }
 0x3b7   :  { %519 = vperm.xlu0 %711, %v489_v7   ;;  %v497_v10 = vmul.f32 %v489_v7, %v441_v28 }
 0x3b8   :  { %v500_v8 = vsub.f32 %v492_v20, %v496_v15 }
 0x3b9   :  { %v501_v18 = vsub.f32 %v493_v9, %v497_v10 }
 0x3ba   :  { %537 = vperm.xlu1 %712, %v499_v11  }
 0x3bb   :  { %547 = vperm.xlu0 %711, %v501_v18  }
 0x3be   :  { %542 = vperm.xlu1 %712, %v500_v8  }
 0x3bf   :  { %585 = vperm.xlu0 %711, %v575_v21  }
 0x3c2   :  { %580 = vperm.xlu1 %712, %v574_v6  }
 0x3c3   :  { %595 = vperm.xlu0 %711, %v577_v22  }
 0x3c6   :  { %590 = vperm.xlu1 %712, %v576_v24  }
 0x3ca   :  { %627 = vperm.xlu1 %712, %v624_v26  }
 0x429   :  { %v505_v28 = vpop.permute.xlu0 %504 }
 0x42a   :  { %v522_v34 = vmul.f32 %v505_v28, %v991_v14  ;;  %v523_v35 = vmul.f32 %v505_v28, %v993_v16 }
 0x42d   :  { %v510_v32 = vpop.permute.xlu1 %509  ;;  %v533_v33 = vpop.permute.xlu0 %532 }
 0x42e   :  { %v550_v38 = vadd.f32 %v533_v33, %v522_v34  ;;  %v551_v39 = vadd.f32 %v533_v33, %v523_v35  ;;  %v524_v40 = vmul.f32 %v510_v32, %v1001_v27  ;;  %v525_v41 = vmul.f32 %v510_v32, %v1003_v30 }
 0x42f   :  { %v631_v32 = vshrl.u32 %v630_v60, 7 }
 0x430   :  { %v558_v54 = vmax.f32 %v550_v38, 0.0  ;;  %v559_v55 = vmax.f32 %v551_v39, 0.0 }
 0x431   :  { %v632_v35 = vsub.s32 0, %v631_v32 }
 0x432   :  { %v566_v5 = vadd.f32 %v558_v54, %v280_v50 }
 0x435   :  { %v515_v36 = vpop.permute.xlu1 %514 }
 0x436   :  { %v520_v37 = vpop.permute.xlu0 %519  ;;  %v526_v16 = vmul.f32 %v515_v36, %v1011_v42  ;;  %v527_v57 = vmul.f32 %v515_v36, %v1013_v43 }
 0x437   :  { %v528_v56 = vmul.f32 %v520_v37, %v1015_v52  ;;  %v529_v14 = vmul.f32 %v520_v37, %v1017_v53  ;;  %v567_v52 = vadd.f32 %v559_v55, %v281_v12 }
 0x439   :  { %v538_v44 = vpop.permute.xlu1 %537 }
 0x43a   :  { %v548_v47 = vpop.permute.xlu0 %547  ;;  %v552_v17 = vadd.f32 %v538_v44, %v524_v40  ;;  %v553_v19 = vadd.f32 %v538_v44, %v525_v41 }
 0x43b   :  { %v556_v29 = vadd.f32 %v548_v47, %v528_v56  ;;  %v557_v27 = vadd.f32 %v548_v47, %v529_v14 }
 0x43c   :  { %v560_v58 = vmax.f32 %v552_v17, 0.0  ;;  %v561_v61 = vmax.f32 %v553_v19, 0.0 }
 0x43d   :  { %v543_v31 = vpop.permute.xlu1 %542  ;;  %v564_v3 = vmax.f32 %v556_v29, 0.0  ;;  %v565_v9 = vmax.f32 %v557_v27, 0.0 }
 0x43e   :  { %v554_v30 = vadd.f32 %v543_v31, %v526_v16  ;;  %v555_v2 = vadd.f32 %v543_v31, %v527_v57  ;;  %v586_v4 = vpop.permute.xlu0 %585  ;;  %v568_v53 = vadd.f32 %v560_v58, %v282_v51  ;;  %v569_v42 = vadd.f32 %v561_v61, %v283_v13 }
 0x43f   :  { %v572_v48 = vadd.f32 %v564_v3, %v286_v23  ;;  %v573_v49 = vadd.f32 %v565_v9, %v287_v25  ;;  %v763_v58 = vmov 1966171168  }
 0x440   :  { %v562_v43 = vmax.f32 %v554_v30, 0.0  ;;  %v563_v7 = vmax.f32 %v555_v2, 0.0  ;;  %v600_v18 = vmul.f32 %v586_v4, %v568_v53  ;;  %v601_v20 = vmul.f32 %v586_v4, %v569_v42 }
 0x441   :  { %v581_v10 = vpop.permute.xlu1 %580  ;;  %v654_v61 = vunpack.c.l.s4 %v763_v58 }
 0x442   :  { %v598_v11 = vmul.f32 %v581_v10, %v566_v5  ;;  %v599_v15 = vmul.f32 %v581_v10, %v567_v52  ;;  %v570_v45 = vadd.f32 %v562_v43, %v284_v0  ;;  %v571_v46 = vadd.f32 %v563_v7, %v285_v1  ;;  %v596_v50 = vpop.permute.xlu0 %595 }
 0x443   :  { %v604_v6 = vmul.f32 %v596_v50, %v572_v48  ;;  %v605_v22 = vmul.f32 %v596_v50, %v573_v49  ;;  %v655_v27 = vunpack.c.0.s8 %v654_v61 }
 0x444   :  { %v606_v12 = vadd.f32 %v600_v18, %v598_v11  ;;  %v615_v13 = vadd.f32 %v601_v20, %v599_v15 }
 0x445   :  { %v591_v51 = vpop.permute.xlu1 %590  ;;  %v658_v52 = vsub.s32 %v655_v27, %v631_v32 }
 0x446   :  { %v602_v8 = vmul.f32 %v591_v51, %v570_v45  ;;  %v603_v21 = vmul.f32 %v591_v51, %v571_v46 }
 0x448   :  { %v607_v24 = vadd.f32 %v606_v12, %v602_v8  ;;  %v616_v59 = vadd.f32 %v615_v13, %v603_v21 }
 0x449   :  { %v628_v36 = vpop.permute.xlu1 %627 }
 0x44a   :  { %v608_v0 = vadd.f32 %v607_v24, %v604_v6  ;;  %v617_v26 = vadd.f32 %v616_v59, %v605_v22  ;;  %v633_v41 = vrot.slane %v628_v36, %v632_v35 }
 0x44c   :  { %v609_v1 = vrot.slane %v608_v0, 4  ;;  %v618_v28 = vrot.slane %v617_v26, 4 }
 0x44e   :  { %v610_v62 = vadd.f32 %v609_v1, %v608_v0  ;;  %v619_v23 = vadd.f32 %v618_v28, %v617_v26 }
 0x450   :  { %v611_v63 = vrot.slane %v610_v62, 2  ;;  %v620_v25 = vrot.slane %v619_v23, 2 }
 0x452   :  { %v612_v33 = vadd.f32 %v611_v63, %v610_v62  ;;  %v621_v34 = vadd.f32 %v620_v25, %v619_v23 }
 0x454   :  { %v613_v37 = vrot.slane %v612_v33, 1  ;;  %v622_v38 = vrot.slane %v621_v34, 1 }
 0x456   :  { %v614_v39 = vadd.f32 %v613_v37, %v612_v33  ;;  %v623_v40 = vadd.f32 %v622_v38, %v621_v34 }
 0x458   :  { %v634_v44 = vadd.f32 %v633_v41, %v614_v39  ;;  %v635_v47 = vadd.f32 %v633_v41, %v623_v40 }
 0x45a   :  { %v636_v17 = vsub.f32 0.0, %v634_v44  ;;  %v637_v19 = vsub.f32 0.0, %v635_v47 }
 0x45c   :  { %v638_v54 = vmul.f32 1.442695, %v636_v17  ;;  %v640_v55 = vmul.f32 1.442695, %v637_v19 }
 0x45e   :  { %729 = vpow2.f32 %v638_v54 }
 0x45f   :  { %731 = vpow2.f32 %v640_v55 }
 0x468   :  { %v730_v56 = vpop.eup %729 }
 0x469   :  { %v732_v14 = vpop.eup %731  ;;  %v642_v16 = vadd.f32 1.0, %v730_v56 }
 0x46a   :  { %v643_v57 = vadd.f32 1.0, %v732_v14 }
 0x46b   :  { %733 = vrcp.f32 %v642_v16 }
 0x46c   :  { %735 = vrcp.f32 %v643_v57 }
 0x475   :  { %v734_v29 = vpop.eup %733 }
 0x476   :  { %v736_v31 = vpop.eup %735  ;;  %v646_v30 = vmul.f32 0.998, %v734_v29 }
 0x477   :  { %v647_v2 = vmul.f32 0.998, %v736_v31 }
 0x478   :  { %v648_v4 = vadd.f32 0.001, %v646_v30 }
 0x479   :  { %v649_v5 = vadd.f32 0.001, %v647_v2 }
 0x47b   :  { %v652_v53 = vcombine.low %v648_v4, %v649_v5 }
 0x47d   :  { %v659_v42 = vrot.slane %v652_v53, %v658_v52 }
 0x47f   :  { %v666_v43 = vrot.slane %v659_v42, %v658_v52 }
 0x481   :  { %672 = vst.msk [vmem:[#allocation3] sm:$0x3] %vm670_vm2, %v666_v43 }
 0x482   :  { %748 = shalt.err (!%p745_p4)
}
 0x483   :  { %s749_s13 = scalar_lea.hbm %s1113_s10, 32 }
 0x484   :  { %p750_p5 = scmp.ne.s32.totalorder %s1113_s10, %s749_s13  ;;  %p753_p6 = scmp.lt.u32.totalorder %s749_s13, %s1113_s10 }
 0x486   :  { %p755_p7 = pnand %p753_p6, %p750_p5 }
 0x488   :  { %758 = shalt.err (!%p755_p7)
}
 0x489   :  { %682 = dma.vmem_to_hbm [thread:$0]  %s680_s29, 32, %s1113_s10, [#allocation4]  }
 0x48a   :  { %759 = dma.done.wait [#allocation4], 32  }
 0x48b   :  { %760 = vsyncadd [#allocation4], 4294967264 }
 0x48c   :  { %686 = vsyncpa [#allocation4], 1 }

</bundles_post_ra>
